<compile_context>
chip_gen: v5e
topology: v5e:2x2
jax: 0.10.0
libtpu: 0.0.40
codegen_flags: <defaults>
</compile_context>

<pallas_src>
import functools
import math

import jax
import jax.numpy as jnp
from jax.experimental import pallas as pl
from jax.experimental.pallas import tpu as pltpu

LANE = 128  # per-batch lane-aligned slab width


def _gnn_kernel(data_ref, watt_ref, wts_ref, out_ref, fit_ref, g_scratch, *,
                batch, num_features, hidden_dim):
    """Transposed layout: sublanes = feature index, lanes = node index inside a
    lane-aligned 128-wide per-batch slab (column b*128 + i == sample (b, i)).

      data_ref : (B+1, N+1, N)  data[0][:N] = adj^T; data[1+b] = [X[b]^T ; ones row]
      watt_ref : (N, 128)       [W_att^T | zeros]
      wts_ref  : (3, S, S)      S = max(H, N)+1; packed bias-augmented weights
                                  [0][:H+1, :N+1] = [[W1, b1], [0, 1]]
                                  [1][:N+1, :H+1] = [[W2, b2], [0, 1]]
                                  [2][0:1,  :N+1] = [Wc | bc]
      out_ref  : (1, B*128)     classifier output, out[0, b*128+i] = output[b, i]
      fit_ref  : (N+1, 128)     feature_importance^T in the top-left (N, N) window
      g_scratch: (N+1, B*128)   VMEM scratch for the aggregated features
    """
    B, N, H = batch, num_features, hidden_dim

    # --- hoist every invariant read once ---------------------------------------
    adj_t = data_ref[0][:N, :]              # (N, N)    adj^T
    watt_pad = watt_ref[...]                # (N, 128)  [W_att^T | 0]
    w1a = wts_ref[0][:H + 1, :N + 1]        # (H+1, N+1)
    w2a = wts_ref[1][:N + 1, :H + 1]        # (N+1, H+1)
    wca = wts_ref[2][0:1, :N + 1]           # (1, N+1)

    # --- attention^T, lane-padded to 128 columns --------------------------------
    # softmax over the original last axis becomes a sublane-axis softmax here.
    # Padded columns (>= N) see zero logits -> harmless uniform rows, discarded later.
    logits_t = jnp.dot(adj_t, watt_pad, preferred_element_type=jnp.float32)  # (N,128)
    m = jnp.max(logits_t, axis=0, keepdims=True)
    e = jnp.exp(logits_t - m)
    s = jnp.sum(e, axis=0, keepdims=True)
    r = pl.reciprocal(s, approx=True)       # EUP vrcp (free slot)
    r = r * (2.0 - s * r)                   # one Newton step -> ~f32 accuracy
    att_pad = e * r                         # (N, 128) == [attention^T | junk]

    # --- per-batch attention aggregation into lane-aligned 128-wide slabs -------
    # g[:, b*128+i] = [ (attention @ X[b])[i, :]^T ; 1 ]   (ones row = softmax col sum)
    for b in range(B):
        gb = jnp.dot(data_ref[1 + b], att_pad,
                     preferred_element_type=jnp.float32)          # (N+1, 128)
        g_scratch[:, b * LANE:(b + 1) * LANE] = gb                 # aligned store

    g = g_scratch[...]                                             # (N+1, B*128)

    # --- single batched MLP chain over all lane slabs (biases folded in) --------
    h1 = jnp.maximum(jnp.dot(w1a, g, preferred_element_type=jnp.float32), 0.0)
    #     (H+1, B*128); last row stays 1.0 and carries the next bias
    h2 = jnp.maximum(jnp.dot(w2a, h1, preferred_element_type=jnp.float32), 0.0)
    #     (N+1, B*128); last row stays 1.0 and carries the classifier bias

    # --- feature_importance^T = |mean over batch|, tile-aligned slices ----------
    acc = h2[:, 0:LANE]
    for b in range(1, B):
        acc = acc + h2[:, b * LANE:(b + 1) * LANE]
    fit_ref[...] = jnp.abs(acc * (1.0 / B))                        # (N+1, 128)

    # --- classifier (bias folded): one lane-dense (1, B*128) store --------------
    out_ref[...] = jnp.dot(wca, h2, preferred_element_type=jnp.float32)


@jax.jit
def attention_gnn_forward(X, adj, params):
    """X: (B, N, N) f32, adj: (N, N) f32.
       Returns (output (B, N, 1), feature_importance (N, N))."""
    B, N, _ = X.shape
    H = params["w1"].shape[0]
    S = max(H, N) + 1

    # ---- packed input 1: adj^T + per-batch [X^T ; ones] ------------------------
    adj_t_row = jnp.concatenate(
        [adj.astype(jnp.float32).T, jnp.zeros((1, N), jnp.float32)], axis=0)   # (N+1, N)
    xt_aug = jnp.concatenate(
        [jnp.transpose(X.astype(jnp.float32), (0, 2, 1)),
         jnp.ones((B, 1, N), jnp.float32)], axis=1)                            # (B, N+1, N)
    data = jnp.concatenate([adj_t_row[None], xt_aug], axis=0)                  # (B+1, N+1, N)

    # ---- packed input 2: lane-padded attention weights -------------------------
    watt_pad = jnp.pad(params["w_att"].T.astype(jnp.float32),
                       ((0, 0), (0, LANE - N)))                                # (N, 128)

    # ---- packed input 3: bias-augmented MLP / classifier weights ---------------
    w1a = (jnp.zeros((S, S), jnp.float32)
           .at[:H, :N].set(params["w1"])
           .at[:H, N].set(params["b1"])
           .at[H, N].set(1.0))
    w2a = (jnp.zeros((S, S), jnp.float32)
           .at[:N, :H].set(params["w2"])
           .at[:N, H].set(params["b2"])
           .at[N, H].set(1.0))
    wca = (jnp.zeros((S, S), jnp.float32)
           .at[:1, :N].set(params["wc"])
           .at[0, N].set(params["bc"][0]))
    wts = jnp.stack([w1a, w2a, wca], axis=0)                                   # (3, S, S)

    # ---- advisory cost estimate (tiny kernel; helps XLA scheduling) ------------
    flops = 2 * (N * N * LANE
                 + B * (N + 1) * N * LANE
                 + (H + 1) * (N + 1) * B * LANE
                 + (N + 1) * (H + 1) * B * LANE
                 + (N + 1) * B * LANE)
    transcendentals = N * LANE
    bytes_accessed = 4 * (data.size + watt_pad.size + wts.size
                          + (N + 1) * LANE + B * LANE)

    vmem = pl.BlockSpec(memory_space=pltpu.MemorySpace.VMEM)
    kernel = functools.partial(_gnn_kernel, batch=B, num_features=N, hidden_dim=H)

    out_row, fit_pad = pl.pallas_call(
        kernel,
        out_shape=(jax.ShapeDtypeStruct((1, B * LANE), jnp.float32),
                   jax.ShapeDtypeStruct((N + 1, LANE), jnp.float32)),
        # No grid: single un-pipelined invocation, whole arrays resident in VMEM.
        in_specs=[vmem, vmem, vmem],
        out_specs=(vmem, vmem),
        scratch_shapes=[pltpu.VMEM((N + 1, B * LANE), jnp.float32)],
        cost_estimate=pl.CostEstimate(flops=flops,
                                      transcendentals=transcendentals,
                                      bytes_accessed=bytes_accessed),
    )(data, watt_pad, wts)

    # Layout plumbing back to the PyTorch presentation (fused under jit).
    output = out_row.reshape(B, LANE)[:, :N].reshape(B, N, 1)
    feature_importance = fit_pad[:N, :N].T
    return output, feature_importance


def init_params(key, num_features, hidden_dim):
    """Deterministic synthetic parameters in PyTorch nn.Linear (out, in) layout."""
    k_att, k1, kb1, k2, kb2, kc, kbc = jax.random.split(key, 7)
    a = math.sqrt(6.0 / (num_features + num_features))        # xavier_uniform
    w_att = jax.random.uniform(k_att, (num_features, num_features),
                               jnp.float32, -a, a)
    b1_bound = 1.0 / math.sqrt(num_features)
    w1 = jax.random.uniform(k1, (hidden_dim, num_features), jnp.float32,
                            -b1_bound, b1_bound)
    b1 = jax.random.uniform(kb1, (hidden_dim,), jnp.float32, -b1_bound, b1_bound)
    b2_bound = 1.0 / math.sqrt(hidden_dim)
    w2 = jax.random.uniform(k2, (num_features, hidden_dim), jnp.float32,
                            -b2_bound, b2_bound)
    b2 = jax.random.uniform(kb2, (num_features,), jnp.float32,
                            -b2_bound, b2_bound)
    bc_bound = 1.0 / math.sqrt(num_features)
    wc = jax.random.uniform(kc, (1, num_features), jnp.float32,
                            -bc_bound, bc_bound)
    bc = jax.random.uniform(kbc, (1,), jnp.float32, -bc_bound, bc_bound)
    return dict(w_att=w_att, w1=w1, b1=b1, w2=w2, b2=b2, wc=wc, bc=bc)


def reference_forward(X, adj, p):
    """Pure-JAX reference matching the PyTorch module."""
    att = jax.nn.softmax(p["w_att"] @ adj, axis=-1)
    h = jnp.einsum("nm,bmk->bnk", att, X)
    h = jax.nn.relu(h @ p["w1"].T + p["b1"])
    h = jax.nn.relu(h @ p["w2"].T + p["b2"])
    fi = jnp.abs(h.mean(axis=0))
    out = h @ p["wc"].T + p["bc"]
    return out, fi


if __name__ == "__main__":
    num_features = 10
    hidden_dim = 32
    batch = 2

    key = jax.random.PRNGKey(0)
    k_x, k_adj, k_p = jax.random.split(key, 3)

    X = jax.random.normal(k_x, (batch, num_features, num_features), jnp.float32)
    adj = (jax.random.uniform(k_adj, (num_features, num_features),
                              jnp.float32) > 0.5).astype(jnp.float32)
    params = init_params(k_p, num_features, hidden_dim)

    output, feat_imp = attention_gnn_forward(X, adj, params)
    jax.block_until_ready((output, feat_imp))

    # Sanity check against pure-JAX reference.  Tolerance 1e-3 accounts for the
    # Newton-refined approximate reciprocal in the softmax and MXU accumulation
    # order differences (do not tighten).
    ref_out, ref_fi = reference_forward(X, adj, params)
    assert output.shape == (batch, num_features, 1)
    assert feat_imp.shape == (num_features, num_features)
    assert jnp.allclose(output, ref_out, atol=1e-3, rtol=1e-3)
    assert jnp.allclose(feat_imp, ref_fi, atol=1e-3, rtol=1e-3)

    print("KERNEL_OK")
</pallas_src>

<mosaic_0001>
module attributes {stable_mosaic.version = 11 : i64} {
  func.func @_gnn_kernel(%arg0: memref<3x11x10xf32, #tpu.memory_space<vmem>>, %arg1: memref<10x128xf32, #tpu.memory_space<vmem>>, %arg2: memref<3x33x33xf32, #tpu.memory_space<vmem>>, %arg3: memref<1x256xf32, #tpu.memory_space<vmem>>, %arg4: memref<11x128xf32, #tpu.memory_space<vmem>>, %arg5: memref<11x256xf32, #tpu.memory_space<vmem>>) attributes {dimension_semantics = [], scalar_prefetch = 0 : i64, scratch_operands = 1 : i64, tpu.core_type = #tpu.core_type<tc>} {
    %c0 = arith.constant 0 : index
    %c0_0 = arith.constant 0 : index
    %c0_1 = arith.constant 0 : index
    %0 = vector.load %arg0[%c0, %c0_0, %c0_1] : memref<3x11x10xf32, #tpu.memory_space<vmem>>, vector<1x11x10xf32>
    %1 = vector.shape_cast %0 : vector<1x11x10xf32> to vector<11x10xf32>
    %2 = vector.extract_strided_slice %1 {offsets = [0, 0], sizes = [10, 10], strides = [1, 1]} : vector<11x10xf32> to vector<10x10xf32>
    %c0_2 = arith.constant 0 : index
    %c0_3 = arith.constant 0 : index
    %3 = vector.load %arg1[%c0_2, %c0_3] : memref<10x128xf32, #tpu.memory_space<vmem>>, vector<10x128xf32>
    %c0_4 = arith.constant 0 : index
    %c0_5 = arith.constant 0 : index
    %c0_6 = arith.constant 0 : index
    %4 = vector.load %arg2[%c0_4, %c0_5, %c0_6] : memref<3x33x33xf32, #tpu.memory_space<vmem>>, vector<1x33x33xf32>
    %5 = vector.shape_cast %4 : vector<1x33x33xf32> to vector<33x33xf32>
    %6 = vector.extract_strided_slice %5 {offsets = [0, 0], sizes = [33, 11], strides = [1, 1]} : vector<33x33xf32> to vector<33x11xf32>
    %c1 = arith.constant 1 : index
    %c0_7 = arith.constant 0 : index
    %c0_8 = arith.constant 0 : index
    %7 = vector.load %arg2[%c1, %c0_7, %c0_8] : memref<3x33x33xf32, #tpu.memory_space<vmem>>, vector<1x33x33xf32>
    %8 = vector.shape_cast %7 : vector<1x33x33xf32> to vector<33x33xf32>
    %9 = vector.extract_strided_slice %8 {offsets = [0, 0], sizes = [11, 33], strides = [1, 1]} : vector<33x33xf32> to vector<11x33xf32>
    %c2 = arith.constant 2 : index
    %c0_9 = arith.constant 0 : index
    %c0_10 = arith.constant 0 : index
    %10 = vector.load %arg2[%c2, %c0_9, %c0_10] : memref<3x33x33xf32, #tpu.memory_space<vmem>>, vector<1x33x33xf32>
    %11 = vector.shape_cast %10 : vector<1x33x33xf32> to vector<33x33xf32>
    %12 = vector.extract_strided_slice %11 {offsets = [0, 0], sizes = [1, 11], strides = [1, 1]} : vector<33x33xf32> to vector<1x11xf32>
    %cst = arith.constant dense<0.000000e+00> : vector<10x128xf32>
    %13 = tpu.matmul %2, %3, %cst {dimension_numbers = #tpu.dot_dimension_numbers<[1], [0], [0], [1], [0, 0, 1, 1], [], []>} : vector<10x10xf32>, vector<10x128xf32>, vector<10x128xf32> -> vector<10x128xf32>
    %cst_11 = arith.constant dense<0xFF800000> : vector<128xf32>
    %14 = vector.multi_reduction <maximumf>, %13, %cst_11 [0] : vector<10x128xf32> to vector<128xf32>
    %15 = vector.shape_cast %14 : vector<128xf32> to vector<1x128xf32>
    %16 = vector.broadcast %15 : vector<1x128xf32> to vector<10x128xf32>
    %17 = arith.subf %13, %16 : vector<10x128xf32>
    %18 = math.exp %17 : vector<10x128xf32>
    %cst_12 = arith.constant dense<0.000000e+00> : vector<128xf32>
    %19 = vector.multi_reduction <add>, %18, %cst_12 [0] : vector<10x128xf32> to vector<128xf32>
    %20 = vector.shape_cast %19 : vector<128xf32> to vector<1x128xf32>
    %21 = tpu.reciprocal %20 {approx = true} : vector<1x128xf32> -> vector<1x128xf32>
    %22 = arith.mulf %20, %21 : vector<1x128xf32>
    %cst_13 = arith.constant 2.000000e+00 : f32
    %23 = vector.broadcast %cst_13 : f32 to vector<1x128xf32>
    %24 = arith.subf %23, %22 : vector<1x128xf32>
    %25 = arith.mulf %21, %24 : vector<1x128xf32>
    %26 = vector.broadcast %25 : vector<1x128xf32> to vector<10x128xf32>
    %27 = arith.mulf %18, %26 : vector<10x128xf32>
    %c1_14 = arith.constant 1 : index
    %c0_15 = arith.constant 0 : index
    %c0_16 = arith.constant 0 : index
    %28 = vector.load %arg0[%c1_14, %c0_15, %c0_16] : memref<3x11x10xf32, #tpu.memory_space<vmem>>, vector<1x11x10xf32>
    %29 = vector.shape_cast %28 : vector<1x11x10xf32> to vector<11x10xf32>
    %cst_17 = arith.constant dense<0.000000e+00> : vector<11x128xf32>
    %30 = tpu.matmul %29, %27, %cst_17 {dimension_numbers = #tpu.dot_dimension_numbers<[1], [0], [0], [1], [0, 0, 1, 1], [], []>} : vector<11x10xf32>, vector<10x128xf32>, vector<11x128xf32> -> vector<11x128xf32>
    %c0_18 = arith.constant 0 : index
    %c0_19 = arith.constant 0 : index
    %31 = vector.load %arg5[%c0_18, %c0_19] : memref<11x256xf32, #tpu.memory_space<vmem>>, vector<11x128xf32>
    tpu.vector_store %arg5[%c0_18, %c0_19], %30 {strides = array<i32>} : memref<11x256xf32, #tpu.memory_space<vmem>>, vector<11x128xf32>,
    %c2_20 = arith.constant 2 : index
    %c0_21 = arith.constant 0 : index
    %c0_22 = arith.constant 0 : index
    %32 = vector.load %arg0[%c2_20, %c0_21, %c0_22] : memref<3x11x10xf32, #tpu.memory_space<vmem>>, vector<1x11x10xf32>
    %33 = vector.shape_cast %32 : vector<1x11x10xf32> to vector<11x10xf32>
    %cst_23 = arith.constant dense<0.000000e+00> : vector<11x128xf32>
    %34 = tpu.matmul %33, %27, %cst_23 {dimension_numbers = #tpu.dot_dimension_numbers<[1], [0], [0], [1], [0, 0, 1, 1], [], []>} : vector<11x10xf32>, vector<10x128xf32>, vector<11x128xf32> -> vector<11x128xf32>
    %c0_24 = arith.constant 0 : index
    %c128 = arith.constant 128 : index
    %35 = vector.load %arg5[%c0_24, %c128] : memref<11x256xf32, #tpu.memory_space<vmem>>, vector<11x128xf32>
    tpu.vector_store %arg5[%c0_24, %c128], %34 {strides = array<i32>} : memref<11x256xf32, #tpu.memory_space<vmem>>, vector<11x128xf32>,
    %c0_25 = arith.constant 0 : index
    %c0_26 = arith.constant 0 : index
    %36 = vector.load %arg5[%c0_25, %c0_26] : memref<11x256xf32, #tpu.memory_space<vmem>>, vector<11x256xf32>
    %cst_27 = arith.constant dense<0.000000e+00> : vector<33x256xf32>
    %37 = tpu.matmul %6, %36, %cst_27 {dimension_numbers = #tpu.dot_dimension_numbers<[1], [0], [0], [1], [0, 0, 1, 1], [], []>} : vector<33x11xf32>, vector<11x256xf32>, vector<33x256xf32> -> vector<33x256xf32>
    %cst_28 = arith.constant 0.000000e+00 : f32
    %38 = vector.broadcast %cst_28 : f32 to vector<33x256xf32>
    %39 = arith.maximumf %37, %38 : vector<33x256xf32>
    %cst_29 = arith.constant dense<0.000000e+00> : vector<11x256xf32>
    %40 = tpu.matmul %9, %39, %cst_29 {dimension_numbers = #tpu.dot_dimension_numbers<[1], [0], [0], [1], [0, 0, 1, 1], [], []>} : vector<11x33xf32>, vector<33x256xf32>, vector<11x256xf32> -> vector<11x256xf32>
    %cst_30 = arith.constant 0.000000e+00 : f32
    %41 = vector.broadcast %cst_30 : f32 to vector<11x256xf32>
    %42 = arith.maximumf %40, %41 : vector<11x256xf32>
    %43 = vector.extract_strided_slice %42 {offsets = [0, 0], sizes = [11, 128], strides = [1, 1]} : vector<11x256xf32> to vector<11x128xf32>
    %44 = vector.extract_strided_slice %42 {offsets = [0, 128], sizes = [11, 128], strides = [1, 1]} : vector<11x256xf32> to vector<11x128xf32>
    %45 = arith.addf %43, %44 : vector<11x128xf32>
    %cst_31 = arith.constant 5.000000e-01 : f32
    %46 = vector.broadcast %cst_31 : f32 to vector<11x128xf32>
    %47 = arith.mulf %45, %46 : vector<11x128xf32>
    %48 = math.absf %47 : vector<11x128xf32>
    %c0_32 = arith.constant 0 : index
    %c0_33 = arith.constant 0 : index
    %49 = vector.load %arg4[%c0_32, %c0_33] : memref<11x128xf32, #tpu.memory_space<vmem>>, vector<11x128xf32>
    tpu.vector_store %arg4[%c0_32, %c0_33], %48 {strides = array<i32>} : memref<11x128xf32, #tpu.memory_space<vmem>>, vector<11x128xf32>,
    %cst_34 = arith.constant dense<0.000000e+00> : vector<1x256xf32>
    %50 = tpu.matmul %12, %42, %cst_34 {dimension_numbers = #tpu.dot_dimension_numbers<[1], [0], [0], [1], [0, 0, 1, 1], [], []>} : vector<1x11xf32>, vector<11x256xf32>, vector<1x256xf32> -> vector<1x256xf32>
    %c0_35 = arith.constant 0 : index
    %c0_36 = arith.constant 0 : index
    %51 = vector.load %arg3[%c0_35, %c0_36] : memref<1x256xf32, #tpu.memory_space<vmem>>, vector<1x256xf32>
    tpu.vector_store %arg3[%c0_35, %c0_36], %50 {strides = array<i32>} : memref<1x256xf32, #tpu.memory_space<vmem>>, vector<1x256xf32>,
    return
  }
}

</mosaic_0001>

<bundles_post_ra>
// kernel: attention_gnn_forward.1
= control target key start
LH: loop header
LB: loop body
LE: loop exit
PB: predicated region body
PF: predicated region fallthrough
CT: control target
= control target key end

     0   :  { %vm38_vm0 = vcmask 1041408   ;;  %vm31_vm1 = vcmask 80896   ;;  %s603_s0 = inlined_call_operand.vmem [shape: f32[3,11,10], index: 0, kind: input, shape index: {}]   ;;  %s604_s1 = inlined_call_operand.vmem [shape: f32[10,128], index: 1, kind: input, shape index: {}]   ;;  %s605_s2 = inlined_call_operand.vmem [shape: f32[3,33,33], index: 2, kind: input, shape index: {}]   ;;  %s606_s3 = inlined_call_operand.hbm [shape: f32[1,256], index: 3, kind: output, shape index: {0}]   ;;  %s607_s4 = inlined_call_operand.vmem [shape: f32[11,128], index: 4, kind: output, shape index: {1}]  }
   0x1   :  { %v20_v0 = vld [vmem:[%s604_s1 + $0x8] sm:$0x3]  ;;  %v19_v1 = vld [vmem:[%s604_s1] sm:$0xff] }
   0x2   :  { %454 = vmatpush.msk.msra.mxu1 %vm38_vm0, %v20_v0  ;;  %419 = vmatpush.msk.msra.mxu0 %vm38_vm0, %v20_v0  ;;  %v18_v2 = vld [vmem:[%s603_s0 + $0x8] sm:$0x7]  ;;  %v17_v3 = vld [vmem:[%s603_s0] sm:$0xff] }
   0x3   :  { %10 = vsyncpa [#allocation4], 0  ;;  %v422_v34 = vld [vmem:[%s603_s0 + $0x10] sm:$0xff]  ;;  %v427_v35 = vld [vmem:[%s603_s0 + $0x20] sm:$0xff]  ;;  %vm184_vm2 = vcmask 1042432   ;;  %vm168_vm3 = vcmask 89088  }
   0x4   :  { %455 = vmatpush.msra.mxu1 %v19_v1  ;;  %57 = vmatpush.msra.mxu0 %v19_v1  ;;  %v423_v36 = vld [vmem:[%s603_s0 + $0x18] sm:$0x7]  ;;  %v428_v37 = vld [vmem:[%s603_s0 + $0x28] sm:$0x7]  ;;  %v21_v43 = vld [vmem:[%s605_s2] sm:$0xff]  ;;  %vm272_vm4 = vcmask 1040384  }
   0x5   :  { %421 = vmatmul.msk.f32.vlgmr.msra.gmra.mxu1 %vm31_vm1, %v18_v2  ;;  %420 = vmatmul.msk.f32.vlgmr.msra.gmra.mxu0 %vm31_vm1, %v17_v3  ;;  %v22_v45 = vld [vmem:[%s605_s2 + $0x8] sm:$0xff]  ;;  %v23_v46 = vld [vmem:[%s605_s2 + $0x10] sm:$0xff]  ;;  %v24_v47 = vld [vmem:[%s605_s2 + $0x18] sm:$0xff]  ;;  %vm265_vm5 = vcmask 269312   ;;  %s403_s25 = sshll.u32 %s606_s3, 4  ;;  %s404_s25 = int_to_ptr.hbm [resolvable:$true] %s403_s25 }
   0x6   :  { %v25_v48 = vld [vmem:[%s605_s2 + $0x20] sm:$0x1] }
  0x82   :  { %v62_v4 = vpop.f32.mrf.mxu1  ;;  %v59_v5 = vpop.f32.mrf.mxu0 }
  0x83   :  { %v65_v6 = vsel %vm38_vm0, %v62_v4, -inf }
  0x84   :  { %v66_v7 = vmax.f32 %v59_v5, %v65_v6  ;;  %v417_v6 = vld [vmem:[%s605_s2 + $0x30] sm:$0xff] }
  0x86   :  { %v67_v8 = vrot.slane %v66_v7, 4 }
  0x88   :  { %v68_v9 = vmax.f32 %v66_v7, %v67_v8 }
  0x8a   :  { %v69_v10 = vrot.slane %v68_v9, 2 }
  0x8c   :  { %v70_v11 = vmax.f32 %v68_v9, %v69_v10 }
  0x8e   :  { %v71_v12 = vrot.slane %v70_v11, 1 }
  0x90   :  { %v72_v13 = vmax.f32 %v70_v11, %v71_v12 }
  0x92   :  { %v73_v14 = vsub.f32 %v59_v5, %v72_v13  ;;  %v74_v15 = vsub.f32 %v62_v4, %v72_v13  ;;  %v416_v5 = vld [vmem:[%s605_s2 + $0x28] sm:$0xff] }
  0x94   :  { %v75_v16 = vmul.f32 1.442695, %v73_v14  ;;  %v77_v17 = vmul.f32 1.442695, %v74_v15 }
  0x96   :  { %457 = vpow2.f32 %v75_v16  ;;  %v418_v16 = vld [vmem:[%s605_s2 + $0x50] sm:$0xff]  ;;  %s489_s2 = smov [#allocation3]  }
  0x97   :  { %459 = vpow2.f32 %v77_v17  ;;  %s401_s1 = sshll.u32 %s489_s2, 4  ;;  %s402_s1 = int_to_ptr.vmem [resolvable:$true] %s401_s1 }
  0x9c   :  { %v458_v18 = vpop.eup %457 }
  0x9d   :  { %v460_v19 = vpop.eup %459 }
  0x9e   :  { %v79_v20 = vsel %vm38_vm0, %v460_v19, 0.0 }
  0x9f   :  { %v80_v21 = vadd.f32 %v458_v18, %v79_v20 }
  0xa1   :  { %v81_v22 = vrot.slane %v80_v21, 4 }
  0xa3   :  { %v82_v23 = vadd.f32 %v81_v22, %v80_v21  ;;  %v391_v22 = vlaneseq }
  0xa5   :  { %v83_v24 = vrot.slane %v82_v23, 2  ;;  %vm393_vm6 = vcmp.lt.s32.totalorder %v391_v22, 256 }
  0xa7   :  { %v84_v25 = vadd.f32 %v83_v24, %v82_v23 }
  0xa9   :  { %v85_v26 = vrot.slane %v84_v25, 1 }
  0xab   :  { %v86_v27 = vadd.f32 %v85_v26, %v84_v25 }
  0xad   :  { %461 = vrcp.f32 %v86_v27 }
  0xb3   :  { %v462_v28 = vpop.eup %461 }
  0xb4   :  { %v88_v29 = vmul.f32 %v462_v28, %v86_v27 }
  0xb6   :  { %v89_v30 = vsub.f32 2.0, %v88_v29 }
  0xb8   :  { %v90_v31 = vmul.f32 %v462_v28, %v89_v30 }
  0xba   :  { %v92_v32 = vmul.f32 %v460_v19, %v90_v31  ;;  %v91_v33 = vmul.f32 %v458_v18, %v90_v31 }
  0xbc   :  { %424 = vmatpush.msk.msrb.mxu1 %vm38_vm0, %v92_v32  ;;  %429 = vmatpush.msk.msra.mxu2 %vm38_vm0, %v92_v32 }
  0xbe   :  { %120 = vmatpush.msrb.mxu1 %v91_v33  ;;  %154 = vmatpush.msra.mxu2 %v91_v33 }
  0xbf   :  { %425 = vmatmul.msk.f32.vlgmr.msrb.gmra.mxu1 %vm31_vm1, %v422_v34  ;;  %430 = vmatmul.msk.f32.vlgmr.msra.gmra.mxu2 %vm31_vm1, %v427_v35 }
  0xc7   :  { %426 = vmatmul.msk.f32.gmra.mxu1 %vm31_vm1, %v423_v36  ;;  %431 = vmatmul.msk.f32.gmra.mxu2 %vm31_vm1, %v428_v37 }
 0x13c   :  { %v122_v38 = vpop.f32.mrf.mxu1 }
 0x142   :  { %v156_v39 = vpop.f32.mrf.mxu2 }
 0x144   :  { %v125_v40 = vpop.f32.mrf.mxu1 }
 0x145   :  { %129 = vst [vmem:[#allocation2] sm:$0x7] %v125_v40 }
 0x14a   :  { %v159_v41 = vpop.f32.mrf.mxu2 }
 0x14b   :  { %163 = vst [vmem:[#allocation2 + $0x10] sm:$0x7] %v159_v41 }
 0x14c   :  { %v166_v42 = vld [vmem:[#allocation2] sm:$0x7] }
 0x14d   :  { %432 = vmatpush.msk.msra.mxu3 %vm184_vm2, %v166_v42 }
 0x14f   :  { %206 = vmatpush.msra.mxu3 %v122_v38 }
 0x150   :  { %433 = vmatmul.msk.f32.vlgmr.msra.gmra.mxu3 %vm168_vm3, %v21_v43 }
 0x152   :  { %v167_v44 = vld [vmem:[#allocation2 + $0x10] sm:$0x7] }
 0x153   :  { %438 = vmatpush.msk.msrb.mxu0 %vm184_vm2, %v167_v44 }
 0x155   :  { %238 = vmatpush.msrb.mxu0 %v156_v39 }
 0x156   :  { %439 = vmatmul.msk.f32.vlgmr.msrb.gmra.mxu0 %vm168_vm3, %v21_v43 }
 0x158   :  { %434 = vmatmul.msk.f32.gmra.mxu3 %vm168_vm3, %v22_v45 }
 0x15e   :  { %440 = vmatmul.msk.f32.gmra.mxu0 %vm168_vm3, %v22_v45 }
 0x160   :  { %435 = vmatmul.msk.f32.gmra.mxu3 %vm168_vm3, %v23_v46 }
 0x166   :  { %441 = vmatmul.msk.f32.gmra.mxu0 %vm168_vm3, %v23_v46 }
 0x168   :  { %436 = vmatmul.msk.f32.gmra.mxu3 %vm168_vm3, %v24_v47 }
 0x16e   :  { %442 = vmatmul.msk.f32.gmra.mxu0 %vm168_vm3, %v24_v47 }
 0x170   :  { %437 = vmatmul.msk.f32.gmra.mxu3 %vm168_vm3, %v25_v48 }
 0x176   :  { %443 = vmatmul.msk.f32.gmra.mxu0 %vm168_vm3, %v25_v48 }
 0x1d3   :  { %v208_v49 = vpop.f32.mrf.mxu3  ;;  %v240_v50 = vpop.f32.mrf.mxu0 }
 0x1d4   :  { %v255_v3 = vmax.f32 %v208_v49, 0.0  ;;  %v256_v4 = vmax.f32 %v240_v50, 0.0 }
 0x1db   :  { %v211_v51 = vpop.f32.mrf.mxu3  ;;  %v243_v52 = vpop.f32.mrf.mxu0 }
 0x1dc   :  { %v257_v1 = vmax.f32 %v211_v51, 0.0  ;;  %v258_v2 = vmax.f32 %v243_v52, 0.0 }
 0x1e3   :  { %v214_v53 = vpop.f32.mrf.mxu3  ;;  %v246_v54 = vpop.f32.mrf.mxu0 }
 0x1e4   :  { %v259_v63 = vmax.f32 %v214_v53, 0.0  ;;  %v260_v0 = vmax.f32 %v246_v54, 0.0 }
 0x1eb   :  { %v217_v55 = vpop.f32.mrf.mxu3  ;;  %v249_v56 = vpop.f32.mrf.mxu0 }
 0x1ec   :  { %v261_v59 = vmax.f32 %v217_v55, 0.0  ;;  %v262_v62 = vmax.f32 %v249_v56, 0.0 }
 0x1f3   :  { %v220_v57 = vpop.f32.mrf.mxu3  ;;  %v252_v58 = vpop.f32.mrf.mxu0 }
 0x1f4   :  { %v263_v60 = vmax.f32 %v220_v57, 0.0  ;;  %v264_v61 = vmax.f32 %v252_v58, 0.0 }
 0x1f6   :  { %444 = vmatpush.msk.msra.mxu1 %vm272_vm4, %v263_v60  ;;  %447 = vmatpush.msk.msrb.mxu2 %vm272_vm4, %v264_v61 }
 0x1f8   :  { %291 = vmatpush.msra.mxu1 %v261_v59  ;;  %314 = vmatpush.msrb.mxu2 %v262_v62 }
 0x1fa   :  { %292 = vmatpush.msra.mxu1 %v259_v63  ;;  %315 = vmatpush.msrb.mxu2 %v260_v0 }
 0x1fc   :  { %293 = vmatpush.msra.mxu1 %v257_v1  ;;  %316 = vmatpush.msrb.mxu2 %v258_v2 }
 0x1fe   :  { %294 = vmatpush.msra.mxu1 %v255_v3  ;;  %317 = vmatpush.msrb.mxu2 %v256_v4 }
 0x1ff   :  { %448 = vmatmul.msk.f32.vlgmr.msrb.gmra.mxu2 %vm265_vm5, %v416_v5  ;;  %445 = vmatmul.msk.f32.vlgmr.msra.gmra.mxu1 %vm265_vm5, %v416_v5 }
 0x207   :  { %449 = vmatmul.msk.f32.gmra.mxu2 %vm265_vm5, %v417_v6  ;;  %446 = vmatmul.msk.f32.gmra.mxu1 %vm265_vm5, %v417_v6 }
 0x27c   :  { %v296_v7 = vpop.f32.mrf.mxu1 }
 0x27d   :  { %v325_v8 = vmax.f32 %v296_v7, 0.0 }
 0x282   :  { %v319_v9 = vpop.f32.mrf.mxu2 }
 0x283   :  { %v326_v10 = vmax.f32 %v319_v9, 0.0 }
 0x284   :  { %v299_v11 = vpop.f32.mrf.mxu1 }
 0x285   :  { %v329_v12 = vadd.f32 %v326_v10, %v325_v8  ;;  %v327_v13 = vmax.f32 %v299_v11, 0.0 }
 0x287   :  { %v331_v14 = vmul.f32 0.5, %v329_v12  ;;  %450 = vmatpush.msk.msrb.mxu1 %vm184_vm2, %v327_v13 }
 0x289   :  { %v333_v15 = vand.u32 2147483647, %v331_v14  ;;  %361 = vmatpush.msrb.mxu1 %v325_v8 }
 0x28a   :  { %v322_v17 = vpop.f32.mrf.mxu2  ;;  %451 = vmatmul.msk.f32.vlgmr.msrb.gmra.mxu1 %vm168_vm3, %v418_v16 }
 0x28b   :  { %335 = vst [vmem:[%s607_s4] sm:$0xff] %v333_v15  ;;  %v328_v18 = vmax.f32 %v322_v17, 0.0 }
 0x28d   :  { %v330_v19 = vadd.f32 %v328_v18, %v327_v13  ;;  %452 = vmatpush.msk.msra.mxu2 %vm184_vm2, %v328_v18 }
 0x28f   :  { %v332_v20 = vmul.f32 0.5, %v330_v19  ;;  %381 = vmatpush.msra.mxu2 %v326_v10 }
 0x290   :  { %453 = vmatmul.msk.f32.vlgmr.msra.gmra.mxu2 %vm168_vm3, %v418_v16 }
 0x291   :  { %v334_v21 = vand.u32 2147483647, %v332_v20 }
 0x293   :  { %336 = vst [vmem:[%s607_s4 + $0x8] sm:$0x7] %v334_v21 }
 0x307   :  { %v363_v24 = vpop.f32.mrf.mxu1 }
 0x313   :  { %v383_v23 = vpop.f32.mrf.mxu2 }
 0x314   :  { %v388_v25 = vrot.slane %v383_v23, 7 }
 0x316   :  { %v389_v26 = vsel %vm272_vm4, %v363_v24, %v388_v25 }
 0x317   :  { %395 = vst.msk [vmem:[#allocation3] sm:$0x3] %vm393_vm6, %v389_v26 }
 0x318   :  { %406 = dma.vmem_to_hbm [thread:$0]  %s402_s1, 32, %s404_s25, [#allocation4]  }
 0x319   :  { %487 = dma.done.wait [#allocation4], 32  }
 0x31a   :  { %488 = vsyncadd [#allocation4], 4294967264 }
 0x31b   :  { %415 = vsyncpa [#allocation4], 1 }

</bundles_post_ra>
